<compile_context>
chip_gen: v5e
topology: v5e:2x2
jax: 0.10.0
libtpu: 0.0.40
codegen_flags: <defaults>
</compile_context>

<pallas_src>
import functools
import math

import jax
import jax.numpy as jnp
from jax.experimental import pallas as pl
from jax.experimental.pallas import tpu as pltpu

_VMEM_LIMIT = 64 * 1024 * 1024   # explicit scoped-VMEM limit (fits v7x physical)


# ---------------------------------------------------------------------------
# Row-tiled linear kernel (projections and fc_out).  Inputs are expected to be
# pre-cast to the MXU operand dtype (bf16 for perf, f32 for verification);
# accumulation is always f32.
# ---------------------------------------------------------------------------
def _matmul_kernel(x_ref, w_ref, o_ref):
    o_ref[...] = jnp.dot(x_ref[...], w_ref[...],
                         preferred_element_type=jnp.float32).astype(o_ref.dtype)


def _matmul_bias_kernel(x_ref, w_ref, b_ref, o_ref):
    o_ref[...] = (jnp.dot(x_ref[...], w_ref[...],
                          preferred_element_type=jnp.float32)
                  + b_ref[...]).astype(o_ref.dtype)


def _pick_row_tile(m, cap=512):
    if m <= cap:
        return m
    for t in (512, 256, 128, 64, 32, 16, 8):
        if t <= cap and m % t == 0:
            return t
    return m


def _linear(x, w, bias=None, *, out_dtype=jnp.float32, row_tile_cap=512):
    m, e_in = x.shape
    e_out = w.shape[1]
    tm = _pick_row_tile(m, row_tile_cap)
    grid = (m // tm,)

    in_specs = [
        pl.BlockSpec((tm, e_in), lambda i: (i, 0)),      # row tile
        pl.BlockSpec((e_in, e_out), lambda i: (0, 0)),   # weight resident in VMEM
    ]
    args = [x, w]
    if bias is None:
        kernel = _matmul_kernel
    else:
        kernel = _matmul_bias_kernel
        in_specs.append(pl.BlockSpec((1, e_out), lambda i: (0, 0)))
        args.append(bias.reshape(1, e_out).astype(jnp.float32))  # bias stays f32

    return pl.pallas_call(
        kernel,
        out_shape=jax.ShapeDtypeStruct((m, e_out), out_dtype),
        grid=grid,
        in_specs=in_specs,
        out_specs=pl.BlockSpec((tm, e_out), lambda i: (i, 0)),
        compiler_params=pltpu.CompilerParams(
            dimension_semantics=("parallel",),
            vmem_limit_bytes=_VMEM_LIMIT),
    )(*args)


# ---------------------------------------------------------------------------
# Fused-head flash attention kernel.
#   q_ref/k_ref/v_ref : (1, bq|bk, E) tiles in the compute dtype (q pre-scaled)
#   ml_ref            : (heads, bq, 2) f32 scratch; lane 0 = running max m,
#                       lane 1 = running sum l
#   acc_ref           : (bq, E) f32 lane-dense output accumulator
# ---------------------------------------------------------------------------
def _flash_mha_kernel(*refs, heads, head_dim, fill, mask_mode, block_q,
                      block_k):
    if mask_mode == "dense":
        q_ref, k_ref, v_ref, mask_ref, o_ref, ml_ref, acc_ref = refs
    else:
        q_ref, k_ref, v_ref, o_ref, ml_ref, acc_ref = refs
        mask_ref = None

    qi = pl.program_id(1)
    ki = pl.program_id(2)
    D = head_dim
    f32 = jnp.float32

    @pl.when(ki == 0)
    def _init():
        ml_ref[:, :, 0:1] = jnp.full((heads, block_q, 1), -jnp.inf, f32)
        ml_ref[:, :, 1:2] = jnp.zeros((heads, block_q, 1), f32)
        acc_ref[...] = jnp.zeros_like(acc_ref)

    def step(masked):
        q = q_ref[0]          # (bq, E), compute dtype, already scaled by 1/sqrt(E)
        k = k_ref[0]          # (bk, E)
        v = v_ref[0]          # (bk, E)

        keep = None
        if masked:
            if mask_mode == "causal":
                q_pos = qi * block_q + jax.lax.broadcasted_iota(
                    jnp.int32, (block_q, block_k), 0)
                k_pos = ki * block_k + jax.lax.broadcasted_iota(
                    jnp.int32, (block_q, block_k), 1)
                keep = q_pos >= k_pos
            else:
                keep = mask_ref[0, 0] != 0

        # TODO(synk): for heads >= 8 switch this static unroll to
        # lax.fori_loop(..., unroll=2) with pl.ds(h*D, D) (or a heads grid
        # axis) to bound vreg live ranges.
        for h in range(heads):
            q_h = q[:, h * D:(h + 1) * D]           # (bq, D)
            k_h = k[:, h * D:(h + 1) * D]           # (bk, D)
            v_h = v[:, h * D:(h + 1) * D]           # (bk, D)

            # (bq, bk) scores, f32 accumulation on the MXU (no k.T copy).
            s = jax.lax.dot_general(q_h, k_h, (((1,), (1,)), ((), ())),
                                    preferred_element_type=f32)
            if masked:
                # masked_fill applied in f32 (fill already pre-scaled).
                s = jnp.where(keep, s, jnp.float32(fill))

            m_prev = ml_ref[h, :, 0:1]                               # (bq, 1)
            l_prev = ml_ref[h, :, 1:2]                               # (bq, 1)
            m_new = jnp.maximum(m_prev, jnp.max(s, axis=-1, keepdims=True))
            alpha = jnp.exp(m_prev - m_new)
            p = jnp.exp(s - m_new)                                   # (bq, bk) f32
            ml_ref[h, :, 1:2] = alpha * l_prev + jnp.sum(p, axis=-1,
                                                         keepdims=True)
            ml_ref[h, :, 0:1] = m_new
            pv = jnp.dot(p.astype(v_h.dtype), v_h,
                         preferred_element_type=f32)                 # bf16 MXU
            acc_ref[:, h * D:(h + 1) * D] = (
                alpha * acc_ref[:, h * D:(h + 1) * D] + pv)

    if mask_mode == "causal":
        q_start = qi * block_q
        k_start = ki * block_k
        full_visible = (k_start + (block_k - 1)) <= q_start
        any_visible = k_start <= (q_start + (block_q - 1))

        @pl.when(full_visible)
        def _unmasked_tile():                 # interior tile: no select needed
            step(masked=False)

        @pl.when(jnp.logical_and(any_visible, jnp.logical_not(full_visible)))
        def _diag_tile():                     # diagonal tile: apply causal mask
            step(masked=True)
        # tiles fully above the diagonal are skipped entirely (~2x less work)
    elif mask_mode == "dense":
        step(masked=True)
    else:
        step(masked=False)

    @pl.when(ki == pl.num_programs(2) - 1)
    def _finalize():
        # Once per Q tile, so the exact reciprocal is essentially free.
        for h in range(heads):
            inv_l = pl.reciprocal(ml_ref[h, :, 1:2], approx=False)   # (bq, 1)
            acc_ref[:, h * D:(h + 1) * D] = acc_ref[:, h * D:(h + 1) * D] * inv_l
        # Single lane-dense (bq, E) store.
        o_ref[0] = acc_ref[...].astype(o_ref.dtype)


def _pick_seq_tile(length, cap=256):
    # 256-multiples first (matches the 2x256x256 MXU on v6e/v7x and keeps the
    # v7x 64 MiB VMEM budget); fall back to smaller divisors.
    for t in (256, 128, 64, 32, 16, 8):
        if t <= cap and length % t == 0:
            return t
    return length


def _pick_dense_k_tile(klen):
    # The mask BlockSpec lane dim must be a 128-multiple or the full extent.
    for t in (512, 256, 128):
        if klen % t == 0:
            return t
    return klen


# ---------------------------------------------------------------------------
# Wrapper: full forward pass of the PyTorch module.
# ---------------------------------------------------------------------------
def multi_head_attention(values, keys, query, mask, params, heads, *,
                         block_q=None, block_k=None,
                         compute_dtype=jnp.bfloat16):
    """mask: None | "causal" (generated in-kernel) | dense array broadcastable
    to (N, 1, qlen, klen)."""
    N, vlen, E = values.shape
    klen = keys.shape[1]
    qlen = query.shape[1]
    D = E // heads
    assert D * heads == E, "embed_size must be divisible by heads"
    assert vlen == klen, "key/value lengths must match"
    f32 = jnp.float32
    cdt = compute_dtype

    # ---- hoisted per-head Q/K/V projections ------------------------------
    # torch nn.Linear: y = x @ W.T, weight (D, D) shared across heads, so the
    # projection is one (N*L*heads, D) @ (D, D) matmul on the reshaped slab
    # (pure reshape, no transpose).  The 1/sqrt(embed_size) softmax scale is
    # folded into the Q weight.
    scale = 1.0 / math.sqrt(E)
    wq = (params["wq"].T.astype(f32) * scale).astype(cdt)
    wk = params["wk"].T.astype(cdt)
    wv = params["wv"].T.astype(cdt)

    q_p = _linear(query.reshape(N * qlen * heads, D).astype(cdt), wq,
                  out_dtype=cdt).reshape(N, qlen, E)
    k_p = _linear(keys.reshape(N * klen * heads, D).astype(cdt), wk,
                  out_dtype=cdt).reshape(N, klen, E)
    v_p = _linear(values.reshape(N * vlen * heads, D).astype(cdt), wv,
                  out_dtype=cdt).reshape(N, vlen, E)

    # ---- fused-head flash attention --------------------------------------
    if mask is None:
        mode = "none"
    elif isinstance(mask, str):
        assert mask == "causal", "string mask must be 'causal'"
        mode = "causal"
    else:
        mode = "dense"
        # TODO(synk): per-head dense masks (N, H, Q, K) are collapsed to
        # (N, 1, Q, K) here; only head-shared masks are supported.

    bq = block_q if block_q is not None else _pick_seq_tile(qlen)
    if mode == "dense":
        bk = block_k if block_k is not None else _pick_dense_k_tile(klen)
        assert bk % 128 == 0 or bk == klen, \
            "dense-mask block_k must be a 128-multiple or the full key length"
    else:
        bk = block_k if block_k is not None else _pick_seq_tile(klen)
    assert qlen % bq == 0 and klen % bk == 0

    fill = -1e20 * scale            # masked_fill happens before the scaling
    grid = (N, qlen // bq, klen // bk)

    kernel = functools.partial(
        _flash_mha_kernel, heads=heads, head_dim=D, fill=fill,
        mask_mode=mode, block_q=bq, block_k=bk)

    in_specs = [
        pl.BlockSpec((1, bq, E), lambda n, qi, ki: (n, qi, 0)),
        # TODO(synk): add pipeline_mode=pl.Buffered(3) to K/V if profiling
        # shows exposed DMA on the ki axis (only once the VMEM budget allows).
        pl.BlockSpec((1, bk, E), lambda n, qi, ki: (n, ki, 0)),
        pl.BlockSpec((1, bk, E), lambda n, qi, ki: (n, ki, 0)),
    ]
    args = [q_p, k_p, v_p]
    if mode == "dense":
        mask_b = jnp.broadcast_to(mask != 0, (N, 1, qlen, klen)).astype(jnp.int8)
        in_specs.append(
            pl.BlockSpec((1, 1, bq, bk), lambda n, qi, ki: (n, 0, qi, ki)))
        args.append(mask_b)

    attn = pl.pallas_call(
        kernel,
        out_shape=jax.ShapeDtypeStruct((N, qlen, E), cdt),
        grid=grid,
        in_specs=in_specs,
        out_specs=pl.BlockSpec((1, bq, E), lambda n, qi, ki: (n, qi, 0)),
        scratch_shapes=[
            pltpu.VMEM((heads, bq, 2), f32),   # m (lane 0) + l (lane 1)
            pltpu.VMEM((bq, E), f32),          # lane-dense output accumulator
        ],
        compiler_params=pltpu.CompilerParams(
            dimension_semantics=("parallel", "parallel", "arbitrary"),
            vmem_limit_bytes=_VMEM_LIMIT),
    )(*args)

    # ---- output projection: attention output is already (N, qlen, E)
    # lane-dense, so no transpose before fc_out ----------------------------
    out = _linear(attn.reshape(N * qlen, E), params["wo"].T.astype(cdt),
                  bias=params["bo"].astype(f32), out_dtype=f32)
    return out.reshape(N, qlen, E)


# ---------------------------------------------------------------------------
# Pure-JAX reference (mirrors the PyTorch forward) for verification.
# ---------------------------------------------------------------------------
def _reference(values, keys, query, mask, params, heads):
    N, vlen, E = values.shape
    klen, qlen = keys.shape[1], query.shape[1]
    D = E // heads
    v = values.reshape(N, vlen, heads, D) @ params["wv"].T
    k = keys.reshape(N, klen, heads, D) @ params["wk"].T
    q = query.reshape(N, qlen, heads, D) @ params["wq"].T
    energy = jnp.einsum("nqhd,nkhd->nhqk", q, k)
    if mask is not None:
        energy = jnp.where(mask == 0, jnp.float32(-1e20), energy)
    attn = jax.nn.softmax(energy / math.sqrt(E), axis=3)
    out = jnp.einsum("nhql,nlhd->nqhd", attn, v).reshape(N, qlen, heads * D)
    return out @ params["wo"].T + params["bo"]


if __name__ == "__main__":
    N, SEQ, E, H = 2, 16, 32, 4
    D = E // H

    root = jax.random.PRNGKey(0)
    kv, kk, kq, kwv, kwk, kwq, kwo, kbo = jax.random.split(root, 8)

    values = jax.random.normal(kv, (N, SEQ, E), jnp.float32)
    keys_in = jax.random.normal(kk, (N, SEQ, E), jnp.float32)
    query = jax.random.normal(kq, (N, SEQ, E), jnp.float32)

    # deterministic synthetic parameters (torch Linear weight shape = (out, in))
    params = {
        "wv": jax.random.normal(kwv, (D, D), jnp.float32) * 0.1,
        "wk": jax.random.normal(kwk, (D, D), jnp.float32) * 0.1,
        "wq": jax.random.normal(kwq, (D, D), jnp.float32) * 0.1,
        "wo": jax.random.normal(kwo, (E, E), jnp.float32) * 0.1,
        "bo": jax.random.normal(kbo, (E,), jnp.float32) * 0.1,
    }

    # Explicit causal mask (N, 1, Q, K) for the reference and the dense path.
    mask = jnp.broadcast_to(
        jnp.tril(jnp.ones((SEQ, SEQ), jnp.int32))[None, None],
        (N, 1, SEQ, SEQ))

    ref_masked = _reference(values, keys_in, query, mask, params, H)
    ref_unmasked = _reference(values, keys_in, query, None, params, H)

    # 1) f32 compute path: tight check of kernel logic (causal, block-skipped).
    out_f32 = jax.block_until_ready(
        multi_head_attention(values, keys_in, query, "causal", params, H,
                             block_q=8, block_k=8,
                             compute_dtype=jnp.float32))
    assert out_f32.shape == (N, SEQ, E)
    assert jnp.allclose(out_f32, ref_masked, rtol=2e-3, atol=2e-3), \
        "causal f32 mismatch"

    # 2) bf16 MXU-operand path (default): causal, dense mask, and no mask.
    out_c = jax.block_until_ready(
        multi_head_attention(values, keys_in, query, "causal", params, H,
                             block_q=8, block_k=8))
    assert jnp.allclose(out_c, ref_masked, rtol=3e-2, atol=3e-2), \
        "causal bf16 mismatch"

    out_d = jax.block_until_ready(
        multi_head_attention(values, keys_in, query, mask, params, H,
                             block_q=8))
    assert jnp.allclose(out_d, ref_masked, rtol=3e-2, atol=3e-2), \
        "dense-mask bf16 mismatch"

    out_n = jax.block_until_ready(
        multi_head_attention(values, keys_in, query, None, params, H,
                             block_q=8, block_k=8))
    assert jnp.allclose(out_n, ref_unmasked, rtol=3e-2, atol=3e-2), \
        "unmasked bf16 mismatch"

    print("KERNEL_OK")
</pallas_src>

<mosaic_0001>
module attributes {stable_mosaic.version = 11 : i64} {
  func.func @_matmul_kernel(%arg0: i32, %arg1: memref<128x8xf32, #tpu.memory_space<vmem>>, %arg2: memref<8x8xf32, #tpu.memory_space<vmem>>, %arg3: memref<128x8xf32, #tpu.memory_space<vmem>>) attributes {dimension_semantics = [#tpu.dimension_semantics<parallel>], iteration_bounds = array<i64: 1>, scalar_prefetch = 0 : i64, scratch_operands = 0 : i64, tpu.core_type = #tpu.core_type<tc>, window_params = [{transform_indices = @transform_0, window_bounds = array<i64: 128, 8>}, {pipeline_mode = #tpu.pipeline_mode<synchronous>, transform_indices = @transform_1, window_bounds = array<i64: 8, 8>}, {transform_indices = @transform_2, window_bounds = array<i64: 128, 8>}]} {
    %c0 = arith.constant 0 : index
    %c0_0 = arith.constant 0 : index
    %0 = vector.load %arg1[%c0, %c0_0] : memref<128x8xf32, #tpu.memory_space<vmem>>, vector<128x8xf32>
    %c0_1 = arith.constant 0 : index
    %c0_2 = arith.constant 0 : index
    %1 = vector.load %arg2[%c0_1, %c0_2] : memref<8x8xf32, #tpu.memory_space<vmem>>, vector<8x8xf32>
    %cst = arith.constant dense<0.000000e+00> : vector<128x8xf32>
    %2 = tpu.matmul %0, %1, %cst {dimension_numbers = #tpu.dot_dimension_numbers<[1], [0], [0], [1], [0, 0, 1, 1], [], []>} : vector<128x8xf32>, vector<8x8xf32>, vector<128x8xf32> -> vector<128x8xf32>
    %c0_3 = arith.constant 0 : index
    %c0_4 = arith.constant 0 : index
    %3 = vector.load %arg3[%c0_3, %c0_4] : memref<128x8xf32, #tpu.memory_space<vmem>>, vector<128x8xf32>
    tpu.vector_store %arg3[%c0_3, %c0_4], %2 {strides = array<i32>} : memref<128x8xf32, #tpu.memory_space<vmem>>, vector<128x8xf32>,
    return
  }
  func.func @transform_0(%arg0: i32) -> (i32, i32) {
    %c0_i32 = arith.constant 0 : i32
    %c0_i32_0 = arith.constant 0 : i32
    return %arg0, %c0_i32 : i32, i32
  }
  func.func @transform_1(%arg0: i32) -> (i32, i32) {
    %c0_i32 = arith.constant 0 : i32
    %c0_i32_0 = arith.constant 0 : i32
    %c0_i32_1 = arith.constant 0 : i32
    return %c0_i32, %c0_i32_0 : i32, i32
  }
  func.func @transform_2(%arg0: i32) -> (i32, i32) {
    %c0_i32 = arith.constant 0 : i32
    %c0_i32_0 = arith.constant 0 : i32
    return %arg0, %c0_i32 : i32, i32
  }
}

</mosaic_0001>

<bundles_post_ra>
// kernel: tpu_custom_call.1
= control target key start
LH: loop header
LB: loop body
LE: loop exit
PB: predicated region body
PF: predicated region fallthrough
CT: control target
= control target key end

     0   :  { %vm28_vm0 = vcmask 64512   ;;  %s327_s1 = inlined_call_operand.vmem [shape: f32[8,8], index: 1, kind: input, shape index: {}]   ;;  %s328_s0 = inlined_call_operand.vmem [shape: f32[128,8], index: 0, kind: input, shape index: {}]   ;;  %s329_s2 = inlined_call_operand.vmem [shape: f32[128,8], index: 2, kind: output, shape index: {}]  }
   0x1   :  { %v27_v0 = vld [vmem:[%s327_s1] sm:$0xff]  ;;  %v20_v5 = vld [vmem:[%s328_s0 + $0x48] sm:$0xff]  ;;  %v21_v9 = vld [vmem:[%s328_s0 + $0x50] sm:$0xff] }
   0x2   :  { %v19_v1 = vld [vmem:[%s328_s0 + $0x40] sm:$0xff]  ;;  %179 = vmatpush.msra.mxu2 %v27_v0  ;;  %180 = vmatpush.msra.mxu3 %v27_v0  ;;  %v24_v6 = vld [vmem:[%s328_s0 + $0x68] sm:$0xff]  ;;  %v25_v10 = vld [vmem:[%s328_s0 + $0x70] sm:$0xff] }
   0x3   :  { %v23_v2 = vld [vmem:[%s328_s0 + $0x60] sm:$0xff]  ;;  %170 = vmatmul.msk.f32.vlgmr.msra.gmra.mxu2 %vm28_vm0, %v19_v1  ;;  %92 = vmatpush.msra.mxu0 %v27_v0  ;;  %v12_v7 = vld [vmem:[%s328_s0 + $0x8] sm:$0xff]  ;;  %v13_v11 = vld [vmem:[%s328_s0 + $0x10] sm:$0xff] }
   0x4   :  { %v11_v3 = vld [vmem:[%s328_s0] sm:$0xff]  ;;  %174 = vmatmul.msk.f32.vlgmr.msra.gmra.mxu3 %vm28_vm0, %v23_v2  ;;  %178 = vmatpush.msra.mxu1 %v27_v0  ;;  %v16_v8 = vld [vmem:[%s328_s0 + $0x28] sm:$0xff]  ;;  %v17_v12 = vld [vmem:[%s328_s0 + $0x30] sm:$0xff] }
   0x5   :  { %v15_v4 = vld [vmem:[%s328_s0 + $0x20] sm:$0xff]  ;;  %162 = vmatmul.msk.f32.vlgmr.msra.gmra.mxu0 %vm28_vm0, %v11_v3  ;;  %v22_v13 = vld [vmem:[%s328_s0 + $0x58] sm:$0xff] }
   0x6   :  { %166 = vmatmul.msk.f32.vlgmr.msra.gmra.mxu1 %vm28_vm0, %v15_v4  ;;  %v26_v14 = vld [vmem:[%s328_s0 + $0x78] sm:$0xff] }
   0x7   :  { %v14_v15 = vld [vmem:[%s328_s0 + $0x18] sm:$0xff] }
   0x8   :  { %v18_v16 = vld [vmem:[%s328_s0 + $0x38] sm:$0xff] }
   0xb   :  { %171 = vmatmul.msk.f32.gmra.mxu2 %vm28_vm0, %v20_v5 }
   0xc   :  { %175 = vmatmul.msk.f32.gmra.mxu3 %vm28_vm0, %v24_v6 }
   0xd   :  { %163 = vmatmul.msk.f32.gmra.mxu0 %vm28_vm0, %v12_v7 }
   0xe   :  { %167 = vmatmul.msk.f32.gmra.mxu1 %vm28_vm0, %v16_v8 }
  0x13   :  { %172 = vmatmul.msk.f32.gmra.mxu2 %vm28_vm0, %v21_v9 }
  0x14   :  { %176 = vmatmul.msk.f32.gmra.mxu3 %vm28_vm0, %v25_v10 }
  0x15   :  { %164 = vmatmul.msk.f32.gmra.mxu0 %vm28_vm0, %v13_v11 }
  0x16   :  { %168 = vmatmul.msk.f32.gmra.mxu1 %vm28_vm0, %v17_v12 }
  0x1b   :  { %173 = vmatmul.msk.f32.gmra.mxu2 %vm28_vm0, %v22_v13 }
  0x1c   :  { %177 = vmatmul.msk.f32.gmra.mxu3 %vm28_vm0, %v26_v14 }
  0x1d   :  { %165 = vmatmul.msk.f32.gmra.mxu0 %vm28_vm0, %v14_v15 }
  0x1e   :  { %169 = vmatmul.msk.f32.gmra.mxu1 %vm28_vm0, %v18_v16 }
  0x82   :  { %v94_v17 = vpop.f32.mrf.mxu0 }
  0x83   :  { %v106_v18 = vpop.f32.mrf.mxu1  ;;  %142 = vst.msk [vmem:[%s329_s2] sm:$0xff] %vm28_vm0, %v94_v17 }
  0x84   :  { %146 = vst.msk [vmem:[%s329_s2 + $0x20] sm:$0xff] %vm28_vm0, %v106_v18 }
  0x86   :  { %v118_v19 = vpop.f32.mrf.mxu2 }
  0x87   :  { %v130_v20 = vpop.f32.mrf.mxu3  ;;  %150 = vst.msk [vmem:[%s329_s2 + $0x40] sm:$0xff] %vm28_vm0, %v118_v19 }
  0x88   :  { %154 = vst.msk [vmem:[%s329_s2 + $0x60] sm:$0xff] %vm28_vm0, %v130_v20 }
  0x8a   :  { %v97_v21 = vpop.f32.mrf.mxu0 }
  0x8b   :  { %v109_v22 = vpop.f32.mrf.mxu1  ;;  %143 = vst.msk [vmem:[%s329_s2 + $0x8] sm:$0xff] %vm28_vm0, %v97_v21 }
  0x8c   :  { %147 = vst.msk [vmem:[%s329_s2 + $0x28] sm:$0xff] %vm28_vm0, %v109_v22 }
  0x8e   :  { %v121_v23 = vpop.f32.mrf.mxu2 }
  0x8f   :  { %v133_v24 = vpop.f32.mrf.mxu3  ;;  %151 = vst.msk [vmem:[%s329_s2 + $0x48] sm:$0xff] %vm28_vm0, %v121_v23 }
  0x90   :  { %155 = vst.msk [vmem:[%s329_s2 + $0x68] sm:$0xff] %vm28_vm0, %v133_v24 }
  0x92   :  { %v100_v25 = vpop.f32.mrf.mxu0 }
  0x93   :  { %v112_v26 = vpop.f32.mrf.mxu1  ;;  %144 = vst.msk [vmem:[%s329_s2 + $0x10] sm:$0xff] %vm28_vm0, %v100_v25 }
  0x94   :  { %148 = vst.msk [vmem:[%s329_s2 + $0x30] sm:$0xff] %vm28_vm0, %v112_v26 }
  0x96   :  { %v124_v27 = vpop.f32.mrf.mxu2 }
  0x97   :  { %v136_v28 = vpop.f32.mrf.mxu3  ;;  %152 = vst.msk [vmem:[%s329_s2 + $0x50] sm:$0xff] %vm28_vm0, %v124_v27 }
  0x98   :  { %156 = vst.msk [vmem:[%s329_s2 + $0x70] sm:$0xff] %vm28_vm0, %v136_v28 }
  0x9a   :  { %v103_v29 = vpop.f32.mrf.mxu0 }
  0x9b   :  { %v115_v30 = vpop.f32.mrf.mxu1  ;;  %145 = vst.msk [vmem:[%s329_s2 + $0x18] sm:$0xff] %vm28_vm0, %v103_v29 }
  0x9c   :  { %149 = vst.msk [vmem:[%s329_s2 + $0x38] sm:$0xff] %vm28_vm0, %v115_v30 }
  0x9e   :  { %v127_v31 = vpop.f32.mrf.mxu2 }
  0x9f   :  { %v139_v32 = vpop.f32.mrf.mxu3  ;;  %153 = vst.msk [vmem:[%s329_s2 + $0x58] sm:$0xff] %vm28_vm0, %v127_v31 }
  0xa0   :  { %157 = vst.msk [vmem:[%s329_s2 + $0x78] sm:$0xff] %vm28_vm0, %v139_v32 }

</bundles_post_ra>
